<compile_context>
chip_gen: v6e
topology: v6e:2x2x1
jax: 0.10.0
libtpu: 0.0.40
codegen_flags: <defaults>
</compile_context>

<pallas_src>
import jax
import jax.numpy as jnp
from jax.experimental import pallas as pl
from jax.experimental.pallas import tpu as pltpu

_LANE = 128
_ENC = 64            # encoder code width
_MID = 256           # fused [enc(64) + pad(64) | h2_pre(128)] width


# ----------------------------- kernel body ---------------------------------

def _ae_kernel(x_ref,
               w1_ref, b1_ref,      # encoder.0 : (D_in, 128), (1, 128)
               wA_ref, bA_ref,      # fused enc.2+dec.0 : (128, 256), (1, 256)
               w4_ref, b4_ref,      # decoder.2 : (128, D_out), (1, D_out)
               enc_ref, dec_ref):
    x = x_ref[...].astype(jnp.bfloat16)                               # (tb, D_in)

    # encoder.0 + ReLU
    h1 = jnp.dot(x, w1_ref[...], preferred_element_type=jnp.float32) + b1_ref[...]
    h1 = jnp.maximum(h1, 0.0)

    # Fused encoder.2 + decoder.0 in one 256-wide MXU pass:
    #   mid[:, :64]  = h1 @ w2  + b2              (= encoded)
    #   mid[:, 128:] = h1 @ (w2@w3) + (b2@w3+b3)  (= decoder.0 pre-activation)
    mid = jnp.dot(h1.astype(jnp.bfloat16), wA_ref[...],
                  preferred_element_type=jnp.float32) + bA_ref[...]
    enc_ref[...] = mid[:, :_ENC].astype(enc_ref.dtype)

    h2 = jnp.maximum(mid[:, _LANE:], 0.0)                             # ReLU

    # decoder.2 + Sigmoid
    logits = jnp.dot(h2.astype(jnp.bfloat16), w4_ref[...],
                     preferred_element_type=jnp.float32) + b4_ref[...]
    dec_ref[...] = jax.nn.sigmoid(logits).astype(dec_ref.dtype)


# ----------------------------- planning helpers ----------------------------

def _chip_info():
    """Per-generation knobs: (TensorCores per chip, scoped-VMEM ceiling)."""
    kind = ""
    try:
        kind = jax.devices()[0].device_kind.lower()
    except Exception:
        pass
    is_v7 = "v7" in kind
    num_cores = 2 if is_v7 else 1
    vmem_ceiling = (40 << 20) if is_v7 else (100 << 20)   # 64 MiB vs 128 MiB physical
    return num_cores, vmem_ceiling


def _working_set(d_in, d_out):
    """(resident weight bytes, per-batch-row streaming+temp bytes)."""
    bf16, f32 = 2, 4
    # Weights/biases are double-buffered by the pipeline even with a constant
    # index map (pl.Buffered(1) would halve this on v7x; left off for
    # portability across jax versions).
    w_bytes = 2 * ((d_in * _LANE + _LANE * _MID + _LANE * d_out) * bf16
                   + (_LANE + _MID + d_out) * f32)
    row_bytes = (2 * d_in * f32                              # x tile (double-buffered)
                 + 2 * _ENC * f32 + 2 * d_out * bf16         # enc/dec tiles (double-buffered)
                 + (_LANE + _MID + _LANE + d_out) * (f32 + bf16))  # h1/mid/h2/logits + bf16 casts
    return w_bytes, row_bytes


def _pick_tb(batch, tb, *, num_cores, max_tb):
    """Sublane-aligned, VMEM-aware, generation-gated batch tile."""
    if tb is not None:
        if batch % tb:
            raise ValueError(f"batch {batch} not divisible by tb {tb}")
        return tb
    max_tb = max(8, min(max_tb, 256))          # ~256 rows already >=85% of roofline
    want_steps = 2 * num_cores if num_cores > 1 else 1
    # Single full-batch step (block dim == array dim is always layout-legal):
    # on 1-TC chips splitting a small batch is pure per-step overhead.
    if batch <= max_tb and (want_steps == 1 or batch < 8 * want_steps):
        return batch
    # Largest multiple-of-8 divisor that fits the cap and leaves >= want_steps steps.
    cap = min(max_tb, batch // want_steps)
    best = 0
    for d in range(8, cap + 1, 8):
        if batch % d == 0:
            best = d
    if best:
        return best
    if batch <= max_tb:                        # awkward batch: one legal full step
        return batch
    for d in range(max_tb, 0, -1):             # last resort: any aligned divisor
        if batch % d == 0 and d % 8 == 0:
            return d
    return batch                               # e.g. huge prime batch: one big step


def _prepare_params(params):
    """Cast weights to bf16, biases to f32, and fuse encoder.2 with decoder.0."""
    f32 = jnp.float32
    w1 = params["w1"].astype(jnp.bfloat16)          # (D_in, 128)
    b1 = params["b1"].astype(f32)                   # (1, 128)
    w2 = params["w2"].astype(f32)                   # (128, 64)
    b2 = params["b2"].astype(f32)                   # (1, 64)
    w3 = params["w3"].astype(f32)                   # (64, 128)
    b3 = params["b3"].astype(f32)                   # (1, 128)
    # Exact fusion (no nonlinearity between enc and decoder.0):
    #   h2_pre = enc @ w3 + b3 = h1 @ (w2 @ w3) + (b2 @ w3 + b3)
    w23 = w2 @ w3                                   # (128, 128)
    b23 = b2 @ w3 + b3                              # (1, 128)
    pad = _LANE - _ENC
    wA = jnp.concatenate([jnp.pad(w2, ((0, 0), (0, pad))), w23], axis=1).astype(jnp.bfloat16)
    bA = jnp.concatenate([jnp.pad(b2, ((0, 0), (0, pad))), b23], axis=1).astype(f32)
    w4 = params["w4"].astype(jnp.bfloat16)          # (128, D_out)
    b4 = params["b4"].astype(f32)                   # (1, D_out)
    return w1, b1, wA, bA, w4, b4


# ----------------------------- wrapper --------------------------------------

def autoencoder_forward(x, params, *, tb=None):
    """x: (B, D_in) f32.  params: dict of transposed f32 weights/biases.

    Returns (encoded (B,64) f32, decoded (B,D_out) bf16).
    """
    B, d_in = x.shape
    d_out = params["w4"].shape[1]

    num_cores, vmem_ceiling = _chip_info()
    w_bytes, row_bytes = _working_set(d_in, d_out)
    vmem_max_tb = max(8, ((vmem_ceiling // 2 - w_bytes) // max(row_bytes, 1)) // 8 * 8)
    tb = _pick_tb(B, tb, num_cores=num_cores, max_tb=vmem_max_tb)
    grid = (B // tb,)

    w1, b1, wA, bA, w4, b4 = _prepare_params(params)

    def w_spec(shape):
        # Grid-invariant weights/biases: resident every step.
        return pl.BlockSpec(shape, lambda i: (0, 0))

    flops = 2 * B * (d_in * _LANE + _LANE * _MID + _LANE * d_out)
    bytes_accessed = (B * d_in * 4
                      + (d_in * _LANE + _LANE * _MID + _LANE * d_out) * 2
                      + (_LANE + _MID + d_out) * 4
                      + B * _ENC * 4 + B * d_out * 2)
    cost = pl.CostEstimate(flops=int(flops), transcendentals=int(B * d_out),
                           bytes_accessed=int(bytes_accessed))

    vmem_limit = int(min(max(2 * (w_bytes + tb * row_bytes) + (4 << 20), 16 << 20),
                         vmem_ceiling))

    enc, dec = pl.pallas_call(
        _ae_kernel,
        out_shape=(
            jax.ShapeDtypeStruct((B, _ENC), jnp.float32),     # encoded (exact width)
            jax.ShapeDtypeStruct((B, d_out), jnp.bfloat16),   # decoded (exact width, bf16)
        ),
        grid_spec=pl.GridSpec(
            grid=grid,
            in_specs=[
                pl.BlockSpec((tb, d_in), lambda i: (i, 0)),      # x tile (streamed, f32)
                w_spec((d_in, _LANE)), w_spec((1, _LANE)),       # encoder.0
                w_spec((_LANE, _MID)), w_spec((1, _MID)),        # fused encoder.2 + decoder.0
                w_spec((_LANE, d_out)), w_spec((1, d_out)),      # decoder.2
            ],
            out_specs=[
                pl.BlockSpec((tb, _ENC), lambda i: (i, 0)),
                pl.BlockSpec((tb, d_out), lambda i: (i, 0)),
            ],
        ),
        compiler_params=pltpu.CompilerParams(
            dimension_semantics=("parallel",),
            vmem_limit_bytes=vmem_limit),
        cost_estimate=cost,
    )(x, w1, b1, wA, bA, w4, b4)

    return enc, dec


# ----------------------------- reference & test -----------------------------

def init_params(key, d_in, d_out):
    """Deterministic synthetic params (PyTorch-Linear shapes, stored transposed, f32)."""
    ks = jax.random.split(key, 8)
    scale = 0.05

    def lin(kw, kb, fan_in, fan_out):
        w = jax.random.normal(kw, (fan_in, fan_out), jnp.float32) * scale
        b = jax.random.normal(kb, (1, fan_out), jnp.float32) * scale
        return w, b

    w1, b1 = lin(ks[0], ks[1], d_in, 128)
    w2, b2 = lin(ks[2], ks[3], 128, 64)
    w3, b3 = lin(ks[4], ks[5], 64, 128)
    w4, b4 = lin(ks[6], ks[7], 128, d_out)
    return dict(w1=w1, b1=b1, w2=w2, b2=b2, w3=w3, b3=b3, w4=w4, b4=b4)


def reference_forward(x, p):
    h1 = jnp.maximum(x @ p["w1"] + p["b1"], 0.0)
    enc = h1 @ p["w2"] + p["b2"]
    h2 = jnp.maximum(enc @ p["w3"] + p["b3"], 0.0)
    dec = jax.nn.sigmoid(h2 @ p["w4"] + p["b4"])
    return enc, dec


if __name__ == "__main__":
    key = jax.random.PRNGKey(0)
    kx, kp = jax.random.split(key)

    B, D_IN, D_OUT = 16, 32, 32
    x = jax.random.normal(kx, (B, D_IN), jnp.float32)
    params = init_params(kp, D_IN, D_OUT)

    enc, dec = autoencoder_forward(x, params)
    jax.block_until_ready((enc, dec))

    # Correctness vs. pure-JAX f32 reference (bf16 matmuls / bf16 decoded output
    # -> looser tolerance).
    enc_ref, dec_ref = reference_forward(x, params)
    assert enc.shape == (B, _ENC) and dec.shape == (B, D_OUT)
    assert jnp.allclose(enc, enc_ref, atol=2e-2, rtol=2e-2)
    assert jnp.allclose(dec.astype(jnp.float32), dec_ref, atol=2e-2, rtol=2e-2)

    print("KERNEL_OK")
</pallas_src>

<mosaic_0001>
module attributes {stable_mosaic.version = 11 : i64} {
  func.func @_ae_kernel(%arg0: i32, %arg1: memref<16x32xf32, #tpu.memory_space<vmem>>, %arg2: memref<32x128xbf16, #tpu.memory_space<vmem>>, %arg3: memref<1x128xf32, #tpu.memory_space<vmem>>, %arg4: memref<128x256xbf16, #tpu.memory_space<vmem>>, %arg5: memref<1x256xf32, #tpu.memory_space<vmem>>, %arg6: memref<128x32xbf16, #tpu.memory_space<vmem>>, %arg7: memref<1x32xf32, #tpu.memory_space<vmem>>, %arg8: memref<16x64xf32, #tpu.memory_space<vmem>>, %arg9: memref<16x32xbf16, #tpu.memory_space<vmem>>) attributes {dimension_semantics = [#tpu.dimension_semantics<parallel>], iteration_bounds = array<i64: 1>, scalar_prefetch = 0 : i64, scratch_operands = 0 : i64, tpu.core_type = #tpu.core_type<tc>, window_params = [{transform_indices = @transform_0, window_bounds = array<i64: 16, 32>}, {pipeline_mode = #tpu.pipeline_mode<synchronous>, transform_indices = @transform_1, window_bounds = array<i64: 32, 128>}, {pipeline_mode = #tpu.pipeline_mode<synchronous>, transform_indices = @transform_2, window_bounds = array<i64: 1, 128>}, {pipeline_mode = #tpu.pipeline_mode<synchronous>, transform_indices = @transform_3, window_bounds = array<i64: 128, 256>}, {pipeline_mode = #tpu.pipeline_mode<synchronous>, transform_indices = @transform_4, window_bounds = array<i64: 1, 256>}, {pipeline_mode = #tpu.pipeline_mode<synchronous>, transform_indices = @transform_5, window_bounds = array<i64: 128, 32>}, {pipeline_mode = #tpu.pipeline_mode<synchronous>, transform_indices = @transform_6, window_bounds = array<i64: 1, 32>}, {transform_indices = @transform_7, window_bounds = array<i64: 16, 64>}, {transform_indices = @transform_8, window_bounds = array<i64: 16, 32>}]} {
    %c0 = arith.constant 0 : index
    %c0_0 = arith.constant 0 : index
    %0 = vector.load %arg1[%c0, %c0_0] : memref<16x32xf32, #tpu.memory_space<vmem>>, vector<16x32xf32>
    %1 = arith.truncf %0 : vector<16x32xf32> to vector<16x32xbf16>
    %c0_1 = arith.constant 0 : index
    %c0_2 = arith.constant 0 : index
    %2 = vector.load %arg2[%c0_1, %c0_2] : memref<32x128xbf16, #tpu.memory_space<vmem>>, vector<32x128xbf16>
    %cst = arith.constant dense<0.000000e+00> : vector<16x128xf32>
    %3 = tpu.matmul %1, %2, %cst {dimension_numbers = #tpu.dot_dimension_numbers<[1], [0], [0], [1], [0, 0, 1, 1], [], []>} : vector<16x32xbf16>, vector<32x128xbf16>, vector<16x128xf32> -> vector<16x128xf32>
    %c0_3 = arith.constant 0 : index
    %c0_4 = arith.constant 0 : index
    %4 = vector.load %arg3[%c0_3, %c0_4] : memref<1x128xf32, #tpu.memory_space<vmem>>, vector<1x128xf32>
    %5 = vector.broadcast %4 : vector<1x128xf32> to vector<16x128xf32>
    %6 = arith.addf %3, %5 : vector<16x128xf32>
    %cst_5 = arith.constant 0.000000e+00 : f32
    %7 = vector.broadcast %cst_5 : f32 to vector<16x128xf32>
    %8 = arith.maximumf %6, %7 : vector<16x128xf32>
    %9 = arith.truncf %8 : vector<16x128xf32> to vector<16x128xbf16>
    %c0_6 = arith.constant 0 : index
    %c0_7 = arith.constant 0 : index
    %10 = vector.load %arg4[%c0_6, %c0_7] : memref<128x256xbf16, #tpu.memory_space<vmem>>, vector<128x256xbf16>
    %cst_8 = arith.constant dense<0.000000e+00> : vector<16x256xf32>
    %11 = tpu.matmul %9, %10, %cst_8 {dimension_numbers = #tpu.dot_dimension_numbers<[1], [0], [0], [1], [0, 0, 1, 1], [], []>} : vector<16x128xbf16>, vector<128x256xbf16>, vector<16x256xf32> -> vector<16x256xf32>
    %c0_9 = arith.constant 0 : index
    %c0_10 = arith.constant 0 : index
    %12 = vector.load %arg5[%c0_9, %c0_10] : memref<1x256xf32, #tpu.memory_space<vmem>>, vector<1x256xf32>
    %13 = vector.broadcast %12 : vector<1x256xf32> to vector<16x256xf32>
    %14 = arith.addf %11, %13 : vector<16x256xf32>
    %15 = vector.extract_strided_slice %14 {offsets = [0, 0], sizes = [16, 64], strides = [1, 1]} : vector<16x256xf32> to vector<16x64xf32>
    %c0_11 = arith.constant 0 : index
    %c0_12 = arith.constant 0 : index
    %16 = vector.load %arg8[%c0_11, %c0_12] : memref<16x64xf32, #tpu.memory_space<vmem>>, vector<16x64xf32>
    tpu.vector_store %arg8[%c0_11, %c0_12], %15 {strides = array<i32>} : memref<16x64xf32, #tpu.memory_space<vmem>>, vector<16x64xf32>,
    %17 = vector.extract_strided_slice %14 {offsets = [0, 128], sizes = [16, 128], strides = [1, 1]} : vector<16x256xf32> to vector<16x128xf32>
    %cst_13 = arith.constant 0.000000e+00 : f32
    %18 = vector.broadcast %cst_13 : f32 to vector<16x128xf32>
    %19 = arith.maximumf %17, %18 : vector<16x128xf32>
    %20 = arith.truncf %19 : vector<16x128xf32> to vector<16x128xbf16>
    %c0_14 = arith.constant 0 : index
    %c0_15 = arith.constant 0 : index
    %21 = vector.load %arg6[%c0_14, %c0_15] : memref<128x32xbf16, #tpu.memory_space<vmem>>, vector<128x32xbf16>
    %cst_16 = arith.constant dense<0.000000e+00> : vector<16x32xf32>
    %22 = tpu.matmul %20, %21, %cst_16 {dimension_numbers = #tpu.dot_dimension_numbers<[1], [0], [0], [1], [0, 0, 1, 1], [], []>} : vector<16x128xbf16>, vector<128x32xbf16>, vector<16x32xf32> -> vector<16x32xf32>
    %c0_17 = arith.constant 0 : index
    %c0_18 = arith.constant 0 : index
    %23 = vector.load %arg7[%c0_17, %c0_18] : memref<1x32xf32, #tpu.memory_space<vmem>>, vector<1x32xf32>
    %24 = vector.broadcast %23 : vector<1x32xf32> to vector<16x32xf32>
    %25 = arith.addf %22, %24 : vector<16x32xf32>
    %26 = arith.negf %25 : vector<16x32xf32>
    %27 = math.exp %26 : vector<16x32xf32>
    %cst_19 = arith.constant 1.000000e+00 : f32
    %28 = vector.broadcast %cst_19 : f32 to vector<16x32xf32>
    %29 = arith.addf %28, %27 : vector<16x32xf32>
    %30 = arith.divf %28, %29 : vector<16x32xf32>
    %31 = arith.truncf %30 : vector<16x32xf32> to vector<16x32xbf16>
    %c0_20 = arith.constant 0 : index
    %c0_21 = arith.constant 0 : index
    %32 = vector.load %arg9[%c0_20, %c0_21] : memref<16x32xbf16, #tpu.memory_space<vmem>>, vector<16x32xbf16>
    tpu.vector_store %arg9[%c0_20, %c0_21], %31 {strides = array<i32>} : memref<16x32xbf16, #tpu.memory_space<vmem>>, vector<16x32xbf16>,
    return
  }
  func.func @transform_0(%arg0: i32) -> (i32, i32) {
    %c0_i32 = arith.constant 0 : i32
    %c0_i32_0 = arith.constant 0 : i32
    return %arg0, %c0_i32 : i32, i32
  }
  func.func @transform_1(%arg0: i32) -> (i32, i32) {
    %c0_i32 = arith.constant 0 : i32
    %c0_i32_0 = arith.constant 0 : i32
    %c0_i32_1 = arith.constant 0 : i32
    return %c0_i32, %c0_i32_0 : i32, i32
  }
  func.func @transform_2(%arg0: i32) -> (i32, i32) {
    %c0_i32 = arith.constant 0 : i32
    %c0_i32_0 = arith.constant 0 : i32
    %c0_i32_1 = arith.constant 0 : i32
    return %c0_i32, %c0_i32_0 : i32, i32
  }
  func.func @transform_3(%arg0: i32) -> (i32, i32) {
    %c0_i32 = arith.constant 0 : i32
    %c0_i32_0 = arith.constant 0 : i32
    %c0_i32_1 = arith.constant 0 : i32
    return %c0_i32, %c0_i32_0 : i32, i32
  }
  func.func @transform_4(%arg0: i32) -> (i32, i32) {
    %c0_i32 = arith.constant 0 : i32
    %c0_i32_0 = arith.constant 0 : i32
    %c0_i32_1 = arith.constant 0 : i32
    return %c0_i32, %c0_i32_0 : i32, i32
  }
  func.func @transform_5(%arg0: i32) -> (i32, i32) {
    %c0_i32 = arith.constant 0 : i32
    %c0_i32_0 = arith.constant 0 : i32
    %c0_i32_1 = arith.constant 0 : i32
    return %c0_i32, %c0_i32_0 : i32, i32
  }
  func.func @transform_6(%arg0: i32) -> (i32, i32) {
    %c0_i32 = arith.constant 0 : i32
    %c0_i32_0 = arith.constant 0 : i32
    %c0_i32_1 = arith.constant 0 : i32
    return %c0_i32, %c0_i32_0 : i32, i32
  }
  func.func @transform_7(%arg0: i32) -> (i32, i32) {
    %c0_i32 = arith.constant 0 : i32
    %c0_i32_0 = arith.constant 0 : i32
    return %arg0, %c0_i32 : i32, i32
  }
  func.func @transform_8(%arg0: i32) -> (i32, i32) {
    %c0_i32 = arith.constant 0 : i32
    %c0_i32_0 = arith.constant 0 : i32
    return %arg0, %c0_i32 : i32, i32
  }
}

</mosaic_0001>

<bundles_post_ra>
// kernel: tpu_custom_call.1
= control target key start
LH: loop header
LB: loop body
LE: loop exit
PB: predicated region body
PF: predicated region fallthrough
CT: control target
= control target key end

     0   :  { %14 = vsyncpa [#allocation3], 0  ;;  %s766_s0 = inlined_call_operand.vmem [shape: f32[16,32], index: 0, kind: input, shape index: {}]   ;;  %s767_s1 = inlined_call_operand.vmem [shape: bf16[32,128], index: 1, kind: input, shape index: {}]   ;;  %s768_s2 = inlined_call_operand.vmem [shape: f32[1,128], index: 2, kind: input, shape index: {}]   ;;  %s769_s3 = inlined_call_operand.hbm [shape: bf16[128,256], index: 3, kind: input, shape index: {}]   ;;  %s770_s4 = inlined_call_operand.vmem [shape: f32[1,256], index: 4, kind: input, shape index: {}]   ;;  %s771_s5 = inlined_call_operand.vmem [shape: bf16[128,32], index: 5, kind: input, shape index: {}]   ;;  %s772_s6 = inlined_call_operand.vmem [shape: f32[1,32], index: 6, kind: input, shape index: {}]   ;;  %s773_s7 = inlined_call_operand.hbm [shape: f32[16,64], index: 7, kind: output, shape index: {0}]   ;;  %s774_s8 = inlined_call_operand.hbm [shape: bf16[16,32], index: 8, kind: output, shape index: {1}]  }
   0x1   :  { %15 = vsyncpa [#allocation4], 0 }
   0x2   :  { %16 = vsyncpa [#allocation7], 0  ;;  %s637_s27 = smov [#allocation2]  }
   0x3   :  { %s28_s28 = sshll.u32 %s637_s27, 4  ;;  %s29_s28 = int_to_ptr.vmem [resolvable:$true] %s28_s28 }
   0x4   :  { %s579_s29 = scalar_lea.vmem %s29_s28, 2048  ;;  %p584_p1 = scmp.lt.s32.totalorder %s29_s28, %s29_s28 }
   0x5   :  { %p580_p0 = scmp.ne.s32.totalorder %s29_s28, %s579_s29  ;;  %p585_p2 = scmp.lt.s32.totalorder %s579_s29, %s579_s29 }
   0x7   :  { %p586_p3 = por %p585_p2, %p584_p1 }
   0x9   :  { %p587_p4 = pnand %p586_p3, %p580_p0 }
   0xb   :  { %590 = shalt.err (!%p587_p4)
}
   0xc   :  { %s638_s30 = smov 128   ;;  %s639_s9 = smov 8  }
   0xd   :  { %34 = dma.hbm_to_vmem [thread:$0]  %s769_s3, 2048, %s29_s28, [#allocation3], %s638_s30, %s638_s30, %s639_s9  }
   0xe   :  { %631 = dma.done.wait [#allocation3], 2048  }
   0xf   :  { %632 = vsyncadd [#allocation3], 4294965248  ;;  %v640_v0 = vmov 0.0   ;;  %vm641_vm0 = vmmov 0   ;;  %v529_v1 = vld [vmem:[%s767_s1 + $0x8] sm:$0xff]   ;;  %v530_v2 = vld [vmem:[%s767_s1] sm:$0xff]   ;;  %v137_v41 = vlaneseq }
  0x10   :  { %491 = vmatprep.subr.bf16.mxu0 %v640_v0  ;;  %495 = vmatprep.mubr.msk.bf16.mxu0 %vm641_vm0, %v640_v0  ;;  %v45_v3 = vld [vmem:[%s766_s0] sm:$0xff]  ;;  %v46_v4 = vld [vmem:[%s766_s0 + $0x8] sm:$0xff]  ;;  %v531_v5 = vld [vmem:[#allocation2 + $0x74] ss:$8 sps:$4 sm:$0xff]   ;;  %vm71_vm1 = vcmask 261120   ;;  %v642_v22 = vmov 0  }
  0x11   :  { %492 = vmatpush3.bf16.msra.mxu0 %v529_v1  ;;  %v533_v6 = vld [vmem:[#allocation2 + $0x70] ss:$8 sps:$4 sm:$0xff]   ;;  %v534_v7 = vld [vmem:[#allocation2 + $0x64] ss:$8 sps:$4 sm:$0xff]   ;;  %v47_v8 = vpack.c.bf16 %v46_v4, %v45_v3  ;;  %227 = vmatprep.subr.bf16.mxu1 %v531_v5  ;;  %v536_v9 = vld [vmem:[#allocation2 + $0x60] ss:$8 sps:$4 sm:$0xff]  }
  0x12   :  { %493 = vmatprep.subr.bf16.mxu0 %v640_v0  ;;  %228 = vmatpush1.bf16.msra.mxu1 %v533_v6  ;;  %v537_v10 = vld [vmem:[#allocation2 + $0x54] ss:$8 sps:$4 sm:$0xff]   ;;  %v539_v11 = vld [vmem:[#allocation2 + $0x50] ss:$8 sps:$4 sm:$0xff]   ;;  %v540_v12 = vld [vmem:[#allocation2 + $0x44] ss:$8 sps:$4 sm:$0xff]  }
  0x13   :  { %229 = vmatprep.subr.bf16.mxu1 %v534_v7  ;;  %v542_v13 = vld [vmem:[#allocation2 + $0x40] ss:$8 sps:$4 sm:$0xff]   ;;  %v543_v14 = vld [vmem:[#allocation2 + $0x34] ss:$8 sps:$4 sm:$0xff]   ;;  %v545_v15 = vld [vmem:[#allocation2 + $0x30] ss:$8 sps:$4 sm:$0xff]   ;;  %259 = vmatprep.mubr.bf16.mxu1 %v642_v22 }
  0x14   :  { %v546_v16 = vld [vmem:[#allocation2 + $0x24] ss:$8 sps:$4 sm:$0xff]   ;;  %v548_v17 = vld [vmem:[#allocation2 + $0x20] ss:$8 sps:$4 sm:$0xff]   ;;  %v549_v18 = vld [vmem:[#allocation2 + $0x14] ss:$8 sps:$4 sm:$0xff]  }
  0x15   :  { %494 = vmatpush3.bf16.msra.mxu0 %v530_v2  ;;  %v551_v19 = vld [vmem:[#allocation2 + $0x10] ss:$8 sps:$4 sm:$0xff]   ;;  %v552_v20 = vld [vmem:[#allocation2 + $0x4] ss:$8 sps:$4 sm:$0xff]   ;;  %v554_v21 = vld [vmem:[#allocation2] ss:$8 sps:$4 sm:$0xff]  }
  0x16   :  { %499 = vmatprep.subr.bf16.mxu0 %v640_v0  ;;  %230 = vmatpush1.bf16.msra.mxu1 %v536_v9  ;;  %v555_v23 = vld [vmem:[%s771_s5 + $0x38] sm:$0xff]   ;;  %v556_v24 = vld [vmem:[%s771_s5 + $0x30] sm:$0xff]   ;;  %v557_v25 = vld [vmem:[%s771_s5 + $0x28] sm:$0xff]   ;;  %v138_v42 = vshrl.u32 %v137_v41, 7  ;;  %vm270_vm2 = vcmask 523264  }
  0x17   :  { %231 = vmatprep.subr.bf16.mxu1 %v537_v10  ;;  %v558_v26 = vld [vmem:[%s771_s5 + $0x20] sm:$0xff]   ;;  %v559_v27 = vld [vmem:[%s771_s5 + $0x18] sm:$0xff]   ;;  %v560_v38 = vld [vmem:[%s771_s5 + $0x10] sm:$0xff]  }
  0x18   :  { %496 = vmatmul.mubr.msk.bf16.vlgmr.msra.gmra.mxu0 %vm71_vm1, %v47_v8  ;;  %v444_v28 = vld [vmem:[%s768_s2] ss:$0 sm:$0xff]  ;;  %v561_v39 = vld [vmem:[%s771_s5 + $0x8] sm:$0xff]   ;;  %v139_v43 = vsub.s32 0, %v138_v42  ;;  %v143_v46 = vsub.s32 1, %v138_v42 }
  0x19   :  { %515 = vmatprep.mubr.msk.bf16.mxu0 %vm641_vm0, %v640_v0  ;;  %500 = vmatpush3.bf16.msra.mxu0 %v555_v23  ;;  %v562_v40 = vld [vmem:[%s771_s5] sm:$0xff]   ;;  %s643_s5 = smov [#allocation5]  }
  0x1a   :  { %232 = vmatpush1.bf16.msra.mxu1 %v539_v11  ;;  %501 = vmatprep.subr.bf16.mxu0 %v640_v0  ;;  %v135_v44 = vld [vmem:[%s770_s4] sm:$0x3]  ;;  %s416_s4 = sshll.u32 %s643_s5, 4  ;;  %s417_s4 = int_to_ptr.vmem [resolvable:$true] %s416_s4 }
  0x1b   :  { %233 = vmatprep.subr.bf16.mxu1 %v540_v12  ;;  %v140_v45 = vrot.slane %v135_v44, %v139_v43  ;;  %v144_v49 = vrot.slane %v135_v44, %v143_v46  ;;  %s591_s16 = scalar_lea.vmem %s417_s4, 256  ;;  %p596_p6 = scmp.lt.s32.totalorder %s417_s4, %s417_s4 }
  0x1c   :  { %p592_p5 = scmp.ne.s32.totalorder %s417_s4, %s591_s16  ;;  %p597_p7 = scmp.lt.s32.totalorder %s591_s16, %s591_s16 }
  0x1d   :  { %502 = vmatpush3.bf16.msra.mxu0 %v556_v24 }
  0x1e   :  { %234 = vmatpush1.bf16.msra.mxu1 %v542_v13  ;;  %503 = vmatprep.subr.bf16.mxu0 %v640_v0  ;;  %p598_p8 = por %p597_p7, %p596_p6 }
  0x1f   :  { %235 = vmatprep.subr.bf16.mxu1 %v543_v14 }
  0x20   :  { %p599_p9 = pnand %p598_p8, %p592_p5 }
  0x21   :  { %504 = vmatpush3.bf16.msra.mxu0 %v557_v25 }
  0x22   :  { %236 = vmatpush1.bf16.msra.mxu1 %v545_v15  ;;  %505 = vmatprep.subr.bf16.mxu0 %v640_v0 }
  0x23   :  { %237 = vmatprep.subr.bf16.mxu1 %v546_v16 }
  0x25   :  { %506 = vmatpush3.bf16.msra.mxu0 %v558_v26 }
  0x26   :  { %238 = vmatpush1.bf16.msra.mxu1 %v548_v17  ;;  %507 = vmatprep.subr.bf16.mxu0 %v640_v0 }
  0x27   :  { %239 = vmatprep.subr.bf16.mxu1 %v549_v18 }
  0x29   :  { %508 = vmatpush3.bf16.msra.mxu0 %v559_v27 }
  0x2a   :  { %240 = vmatpush1.bf16.msra.mxu1 %v551_v19  ;;  %509 = vmatprep.subr.bf16.mxu0 %v640_v0 }
  0x2b   :  { %241 = vmatprep.subr.bf16.mxu1 %v552_v20 }
  0x2d   :  { %510 = vmatpush3.bf16.msra.mxu0 %v560_v38 }
  0x2e   :  { %242 = vmatpush1.bf16.msra.mxu1 %v554_v21  ;;  %511 = vmatprep.subr.bf16.mxu0 %v640_v0 }
  0x31   :  { %512 = vmatpush3.bf16.msra.mxu0 %v561_v39 }
  0x32   :  { %513 = vmatprep.subr.bf16.mxu0 %v640_v0 }
  0x35   :  { %514 = vmatpush3.bf16.msra.mxu0 %v562_v40 }
  0xd8   :  { %v109_v29 = vpop.f32.mrf.mxu0 }
  0xd9   :  { %v110_v31 = vadd.f32 %v444_v28, %v109_v29 }
  0xda   :  { %v497_v30 = vpop.f32.mrf.mxu0 }
  0xdb   :  { %v116_v35 = vmax.f32 %v110_v31, 0.0 }
  0xdc   :  { %v112_v32 = vpop.f32.mrf.mxu0 }
  0xdd   :  { %v113_v33 = vadd.f32 %v444_v28, %v112_v32 }
  0xde   :  { %v498_v34 = vpop.f32.mrf.mxu0 }
  0xdf   :  { %v117_v36 = vmax.f32 %v113_v33, 0.0 }
  0xe1   :  { %v118_v37 = vpack.c.bf16 %v117_v36, %v116_v35 }
  0xe3   :  { %260 = vmatmul.mubr.bf16.vlgmr.msra.gmra.mxu1 %v118_v37 }
 0x1a3   :  { %v261_v47 = vpop.f32.mrf.mxu1 }
 0x1a4   :  { %v262_v48 = vadd.f32 %v261_v47, %v140_v45 }
 0x1a5   :  { %v263_v50 = vpop.f32.mrf.mxu1 }
 0x1a6   :  { %271 = vst.msk [vmem:[#allocation5] sm:$0xff] %vm270_vm2, %v262_v48  ;;  %v264_v52 = vadd.f32 %v263_v50, %v144_v49 }
 0x1a7   :  { %v265_v51 = vpop.f32.mrf.mxu1 }
 0x1a8   :  { %v266_v53 = vadd.f32 %v265_v51, %v140_v45  ;;  %v273_v56 = vmax.f32 %v264_v52, 0.0 }
 0x1a9   :  { %v267_v54 = vpop.f32.mrf.mxu1 }
 0x1aa   :  { %v268_v55 = vadd.f32 %v267_v54, %v144_v49  ;;  %272 = vst.msk [vmem:[#allocation5 + $0x8] sm:$0xff] %vm270_vm2, %v266_v53 }
 0x1ac   :  { %v274_v57 = vmax.f32 %v268_v55, 0.0 }
 0x1ae   :  { %v275_v58 = vpack.c.bf16 %v274_v57, %v273_v56 }
 0x1b0   :  { %516 = vmatmul.mubr.bf16.vlgmr.msra.gmra.mxu0 %v275_v58 }
 0x1b1   :  { %602 = shalt.err (!%p599_p9)
}
 0x1b2   :  { %422 = dma.vmem_to_hbm [thread:$0]  %s417_s4, 256, %s773_s7, [#allocation4], %s638_s30, %s638_s30, %s639_s9   ;;  %vm408_vm3 = vcmask 257024  }
 0x1b3   :  { %v464_v59 = vld [vmem:[%s772_s6] ss:$0 sm:$0xff]  ;;  %s644_s6 = smov [#allocation6]  }
 0x1b4   :  { %s428_s7 = sshll.u32 %s644_s6, 4  ;;  %s429_s7 = int_to_ptr.vmem [resolvable:$true] %s428_s7 }
 0x1b5   :  { %s611_s30 = scalar_lea.vmem %s429_s7, 128  ;;  %p616_p11 = scmp.lt.s32.totalorder %s429_s7, %s429_s7 }
 0x1b6   :  { %p612_p10 = scmp.ne.s32.totalorder %s429_s7, %s611_s30  ;;  %p617_p12 = scmp.lt.s32.totalorder %s611_s30, %s611_s30 }
 0x1b8   :  { %p618_p13 = por %p617_p12, %p616_p11 }
 0x1ba   :  { %p619_p0 = pnand %p618_p13, %p612_p10 }
 0x270   :  { %v381_v60 = vpop.f32.mrf.mxu0 }
 0x271   :  { %v382_v61 = vadd.f32 %v464_v59, %v381_v60 }
 0x272   :  { %v517_v62 = vpop.f32.mrf.mxu0 }
 0x273   :  { %v473_v63 = vmul.f32 -1.442695, %v382_v61 }
 0x274   :  { %v384_v0 = vpop.f32.mrf.mxu0 }
 0x275   :  { %563 = vpow2.f32 %v473_v63  ;;  %v385_v1 = vadd.f32 %v464_v59, %v384_v0 }
 0x276   :  { %v518_v2 = vpop.f32.mrf.mxu0 }
 0x277   :  { %v474_v3 = vmul.f32 -1.442695, %v385_v1 }
 0x279   :  { %565 = vpow2.f32 %v474_v3 }
 0x282   :  { %v564_v4 = vpop.eup %563 }
 0x283   :  { %v394_v5 = vadd.f32 1.0, %v564_v4 }
 0x285   :  { %567 = vrcp.f32 %v394_v5 }
 0x286   :  { %v566_v6 = vpop.eup %565 }
 0x287   :  { %v395_v7 = vadd.f32 1.0, %v566_v6 }
 0x289   :  { %569 = vrcp.f32 %v395_v7 }
 0x292   :  { %v568_v8 = vpop.eup %567 }
 0x293   :  { %v477_v9 = vpack.c.bf16 %v568_v8, %v568_v8 }
 0x295   :  { %409 = vst.msk [vmem:[#allocation6] sm:$0xf] %vm408_vm3, %v477_v9 }
 0x296   :  { %v570_v10 = vpop.eup %569 }
 0x297   :  { %v478_v11 = vpack.c.bf16 %v570_v10, %v570_v10 }
 0x299   :  { %410 = vst.msk [vmem:[#allocation6 + $0x4] sm:$0xf] %vm408_vm3, %v478_v11 }
 0x29a   :  { %622 = shalt.err (!%p619_p0)
}
 0x29b   :  { %s645_s9 = smov 64   ;;  %s646_s1 = smov 4  }
 0x29c   :  { %434 = dma.vmem_to_hbm [thread:$0]  %s429_s7, 128, %s774_s8, [#allocation7], %s645_s9, %s645_s9, %s646_s1  }
 0x29d   :  { %633 = dma.done.wait [#allocation4], 256  }
 0x29e   :  { %634 = vsyncadd [#allocation4], 4294967040 }
 0x29f   :  { %635 = dma.done.wait [#allocation7], 128  }
 0x2a0   :  { %636 = vsyncadd [#allocation7], 4294967168 }
 0x2a1   :  { %441 = vsyncpa [#allocation3], 1 }
 0x2a2   :  { %442 = vsyncpa [#allocation4], 1 }
 0x2a3   :  { %443 = vsyncpa [#allocation7], 1 }

</bundles_post_ra>
